<compile_context>
chip_gen: v7x
topology: tpu7x:2x2x1
jax: 0.10.0
libtpu: 0.0.40
codegen_flags: <defaults>
</compile_context>

<pallas_src>
import functools

import jax
import jax.numpy as jnp
from jax.experimental import pallas as pl


# ----------------------------- Pallas kernel --------------------------------

def gcn_fused_kernel(a_ref, x_ref, w1_ref, b1_ref, w2_ref, b2_ref, o_ref):
    """out = log_softmax(A @ (relu(A @ (X@W1 + b1)) @ W2 + b2), axis=1).

    A, X, W1, W2 arrive as bf16 (MXU-native); biases are f32; every matmul
    accumulates in f32 via preferred_element_type.
    """
    a = a_ref[...]

    # ---- GCNConv 1:  H = relu(A_norm @ (X @ W1 + b1)) ----
    xw = jnp.dot(x_ref[...], w1_ref[...],
                 preferred_element_type=jnp.float32) + b1_ref[...]
    h = jnp.dot(a, xw.astype(jnp.bfloat16), preferred_element_type=jnp.float32)
    h = jnp.maximum(h, 0.0)
    # F.dropout(..., training=False) -> identity in eval mode.

    # ---- GCNConv 2:  logits = A_norm @ (H @ W2 + b2) ----
    hw = jnp.dot(h.astype(jnp.bfloat16), w2_ref[...],
                 preferred_element_type=jnp.float32) + b2_ref[...]
    logits = jnp.dot(a, hw.astype(jnp.bfloat16),
                     preferred_element_type=jnp.float32)

    # ---- stable log_softmax over classes (no padding -> no masking) ----
    m = jnp.max(logits, axis=-1, keepdims=True)
    s = logits - m
    lse = jnp.log(jnp.sum(jnp.exp(s), axis=-1, keepdims=True))
    o_ref[...] = s - lse


# ------------------------------- wrapper -------------------------------------

def gcn_forward(a_bf, x_bf, w1_bf, b1_2d, w2_bf, b2_2d):
    """Fused 2-layer GCN forward.

    Inputs are pre-cast / pre-shaped once outside this function (bf16 A/X/W,
    f32 (1,D) biases).  Returns [N, num_class] f32 log-probs.
    """
    n, feat = x_bf.shape
    hidden = w1_bf.shape[1]
    num_class = w2_bf.shape[1]

    cost = pl.CostEstimate(
        flops=2 * n * (feat * hidden + n * hidden
                       + hidden * num_class + n * num_class),
        transcendentals=n * (num_class + 1),  # exp + log in log_softmax
        bytes_accessed=(a_bf.size * 2 + x_bf.size * 2 + w1_bf.size * 2
                        + w2_bf.size * 2 + b1_2d.size * 4 + b2_2d.size * 4
                        + n * num_class * 4),
    )

    def full(shape):
        # Full-array block: block_shape == array dims, always legal on TPU.
        return pl.BlockSpec(shape, lambda: (0, 0))

    return pl.pallas_call(
        gcn_fused_kernel,
        out_shape=jax.ShapeDtypeStruct((n, num_class), jnp.float32),
        in_specs=[full(a_bf.shape), full(x_bf.shape), full(w1_bf.shape),
                  full(b1_2d.shape), full(w2_bf.shape), full(b2_2d.shape)],
        out_specs=full((n, num_class)),
        cost_estimate=cost,
    )(a_bf, x_bf, w1_bf, b1_2d, w2_bf, b2_2d)


# -------------------- one-time preprocessing (plain JAX glue) ----------------

@functools.partial(jax.jit, static_argnames=("num_nodes",))
def build_norm_adjacency(edge_index, num_nodes):
    """Dense deg^-1/2-normalized adjacency (with self loops) matching GCNConv.

    deg = multiplicity of each node in `row` (self loops included);
    norm_e = deg^-0.5[row_e] * deg^-0.5[col_e]; AggrSum scatter-sums messages
    into `row` (duplicate edges included) -> dense A with A[r,c] += norm.
    Computed ONCE per graph and reused across forward calls.
    """
    self_loops = jnp.stack([jnp.arange(num_nodes, dtype=jnp.int32)] * 2, axis=0)
    ei = jnp.concatenate([edge_index.astype(jnp.int32), self_loops], axis=1)
    row, col = ei[0], ei[1]
    deg = jnp.zeros((num_nodes,), jnp.float32).at[row].add(1.0)
    deg_inv_sqrt = jnp.where(deg > 0, deg ** -0.5, 0.0)
    norm = deg_inv_sqrt[row] * deg_inv_sqrt[col]
    return jnp.zeros((num_nodes, num_nodes), jnp.float32).at[row, col].add(norm)


def prepare_params(w1, b1, w2, b2):
    """One-time param prep (hoisted out of the per-call forward): bf16 MXU
    weights; f32 biases reshaped to (1, D) rows for lane broadcast."""
    return (w1.astype(jnp.bfloat16),
            b1.reshape(1, -1).astype(jnp.float32),
            w2.astype(jnp.bfloat16),
            b2.reshape(1, -1).astype(jnp.float32))


# ---------------------------------- main -------------------------------------

if __name__ == "__main__":
    N_NODE = 32       # num_node
    FEAT_DIM = 16     # feat_dim
    HIDDEN = 16       # GCNConv hidden size from the module
    NUM_CLASS = 4     # num_class
    N_EDGE = 64

    key = jax.random.PRNGKey(0)
    kx, ke, k1, k2, k3, k4 = jax.random.split(key, 6)

    x = jax.random.normal(kx, (N_NODE, FEAT_DIM), jnp.float32)
    edge_index = jax.random.randint(ke, (2, N_EDGE), 0, N_NODE, jnp.int32)

    # nn.Linear-style deterministic init: U(-1/sqrt(fan_in), 1/sqrt(fan_in))
    lim1 = 1.0 / (FEAT_DIM ** 0.5)
    lim2 = 1.0 / (HIDDEN ** 0.5)
    w1 = jax.random.uniform(k1, (FEAT_DIM, HIDDEN), jnp.float32, -lim1, lim1)
    b1 = jax.random.uniform(k2, (HIDDEN,), jnp.float32, -lim1, lim1)
    w2 = jax.random.uniform(k3, (HIDDEN, NUM_CLASS), jnp.float32, -lim2, lim2)
    b2 = jax.random.uniform(k4, (NUM_CLASS,), jnp.float32, -lim2, lim2)

    # Graph + weight preprocessing hoisted out of the per-call forward path.
    a_norm = build_norm_adjacency(edge_index, N_NODE)          # f32, once
    a_bf = a_norm.astype(jnp.bfloat16)                          # once
    x_bf = x.astype(jnp.bfloat16)                               # once
    w1_bf, b1_2d, w2_bf, b2_2d = prepare_params(w1, b1, w2, b2)  # once

    fwd = jax.jit(gcn_forward)
    out = jax.block_until_ready(fwd(a_bf, x_bf, w1_bf, b1_2d, w2_bf, b2_2d))

    # pure-JAX f32 reference check (bf16 MXU inputs -> loosened tolerance)
    h_ref = jnp.maximum(a_norm @ (x @ w1 + b1), 0.0)
    logits_ref = a_norm @ (h_ref @ w2 + b2)
    ref = jax.nn.log_softmax(logits_ref, axis=1)
    assert out.shape == (N_NODE, NUM_CLASS)
    assert jnp.allclose(out, ref, atol=3e-2, rtol=3e-2), (
        float(jnp.max(jnp.abs(out - ref))))

    print("KERNEL_OK")
</pallas_src>

<mosaic_0001>
module attributes {stable_mosaic.version = 11 : i64} {
  func.func private @main(%arg0: i32) attributes {dimension_semantics = [#tpu.dimension_semantics<core_parallel>], iteration_bounds = array<i64: 2>, tpu.core_type = #tpu.core_type<sc_scalar_subcore>, window_params = []} {
    return
  }
}

module attributes {stable_mosaic.version = 11 : i64} {
  func.func private @main(%arg0: i32) attributes {dimension_semantics = [#tpu.dimension_semantics<core_parallel>], iteration_bounds = array<i64: 2>, tpu.core_type = #tpu.core_type<sc_scalar_subcore>, window_params = []} {
    return
  }
}

</mosaic_0001>

<bundles_post_ra>
// kernel: mul.1
= control target key start
LH: loop header
LB: loop body
LE: loop exit
PB: predicated region body
PF: predicated region fallthrough
CT: control target
= control target key end

     0   :  { %s34_s0 = inlined_call_operand.vmem [shape: f32[96], index: 0, kind: input, shape index: {}]   ;;  %s35_s1 = inlined_call_operand.vmem [shape: f32[96], index: 1, kind: input, shape index: {}]   ;;  %s36_s2 = inlined_call_operand.vmem [shape: f32[96], index: 2, kind: output, shape index: {}]  }
   0x1   :  { %v3_v0 = vld [vmem:[%s34_s0] sm:$0x1] }
   0x2   :  { %v4_v1 = vld [vmem:[%s35_s1] sm:$0x1] }
   0x3   :  { %v7_v2 = vmul.f32 %v4_v1, %v3_v0 }
   0x5   :  { %9 = vst [vmem:[%s36_s2] sm:$0x1] %v7_v2 }

</bundles_post_ra>
